<compile_context>
chip_gen: v5e
topology: v5e:2x2
jax: 0.10.0
libtpu: 0.0.40
codegen_flags: <defaults>
</compile_context>

<pallas_src>
import functools

import jax
import jax.numpy as jnp
from jax.experimental import pallas as pl
from jax.experimental.pallas import tpu as pltpu


# ------------------------------------------------------------------
# Pallas kernel: per-row keep/drop probabilities
#   p0 = gumbel_softmax(log(softmax(prob_encoder(feat)) + 1e-8), tau, hard=False)[:, 0]
#   out = clamp(1 - p0, 1e-6, 1)   (one_minus=True, edge dropping)
#   out = clamp(p0,     1e-6, 1)   (one_minus=False, edge adding)
# ------------------------------------------------------------------
def _keep_prob_kernel(x_ref, g_ref, w1_ref, b1_ref, w2d_ref, b2d_ref, o_ref,
                      *, inv_temp, one_minus):
    # x_ref  : (tm, Din)  row features (bf16, MXU input)
    # g_ref  : (1, tm)    lane-dense Gumbel-difference noise  g0 - g1  (f32)
    # w1_ref : (Din, H)   first-layer weight (bf16)
    # b1_ref : (1, H)     first-layer bias (f32)
    # w2d_ref: (1, H)     collapsed second layer  w2[:,0] - w2[:,1]  (f32)
    # b2d_ref: (1,)       collapsed second-layer bias (SMEM scalar)
    # o_ref  : (1, tm)    lane-dense probabilities (f32)

    # Linear(Din, H) + ReLU  (MXU, f32 accumulate)
    h = jnp.dot(x_ref[...], w1_ref[...],
                preferred_element_type=jnp.float32) + b1_ref[...]
    h = jnp.maximum(h, 0.0)                                   # (tm, H) f32

    # Linear(H, 2) collapsed to the class-logit difference, produced directly
    # lane-dense:  d^T = w2d . h^T   (contract H with H) -> (1, tm).
    d = jax.lax.dot_general(
        w2d_ref[...], h, (((1,), (1,)), ((), ())),
        preferred_element_type=jnp.float32) + b2d_ref[0]
    d = jnp.clip(d, -60.0, 60.0)                              # saturation guard

    def sigmoid(t):                                           # EUP exp + vrcp
        return pl.reciprocal(1.0 + jnp.exp(-t), approx=True)

    # log(softmax + 1e-8) collapsed:  lg0 - lg1
    s0 = sigmoid(d)            # softmax class-0 prob
    s1 = sigmoid(-d)           # softmax class-1 prob
    lg = jnp.log(s0 + 1e-8) - jnp.log(s1 + 1e-8)

    # soft gumbel_softmax class-0 prob = sigmoid(((lg0+g0) - (lg1+g1)) / tau)
    p0 = sigmoid((lg + g_ref[...]) * inv_temp)

    keep = 1.0 - p0 if one_minus else p0
    o_ref[...] = jnp.clip(keep, 1e-6, 1.0)


def _keep_probabilities(feat, key, w1, b1, w2, b2, *, temp, one_minus,
                        tm=512, matmul_dtype=jnp.bfloat16):
    """feat: [M, Din]  ->  probabilities [M]  via the Pallas kernel."""
    feat = feat.astype(jnp.float32)
    M, Din = feat.shape
    H = w1.shape[1]

    # Pad rows only up to the 128-lane boundary (<= 127 rows); the grid uses
    # pl.cdiv and tolerates a ragged last block, so no padding up to tm.
    Mp = ((M + 127) // 128) * 128
    if Mp != M:
        feat = jnp.pad(feat, ((0, Mp - M), (0, 0)))
    tm_eff = max(128, (min(tm, Mp) // 128) * 128)

    # Gumbel noise: only g0 - g1 matters after the algebraic collapse.
    # (Same distribution as the torch formulation; RNG stream is jax.random.)
    u = jax.random.uniform(key, (2, Mp), jnp.float32, minval=1e-10, maxval=1.0)
    g = -jnp.log(-jnp.log(u))
    gdiff = (g[0] - g[1]).reshape(1, Mp)                      # lane-dense

    # Collapse Linear(H, 2): only the class-logit difference matters.
    w2diff = (w2[:, 0] - w2[:, 1]).reshape(1, H).astype(jnp.float32)
    b2diff = (b2[..., 0] - b2[..., 1]).reshape(1).astype(jnp.float32)
    b1r = b1.reshape(1, H).astype(jnp.float32)

    feat = feat.astype(matmul_dtype)       # dominant HBM stream in bf16
    w1c = w1.astype(matmul_dtype)

    grid = (pl.cdiv(Mp, tm_eff),)
    kernel = functools.partial(_keep_prob_kernel,
                               inv_temp=float(1.0 / temp),
                               one_minus=one_minus)

    out = pl.pallas_call(
        kernel,
        out_shape=jax.ShapeDtypeStruct((1, Mp), jnp.float32),
        grid=grid,
        in_specs=[
            pl.BlockSpec((tm_eff, Din), lambda i: (i, 0)),        # row features
            pl.BlockSpec((1, tm_eff), lambda i: (0, i)),          # gumbel diff
            pl.BlockSpec((Din, H), lambda i: (0, 0)),             # W1 (resident)
            pl.BlockSpec((1, H), lambda i: (0, 0)),               # b1
            pl.BlockSpec((1, H), lambda i: (0, 0)),               # w2[:,0]-w2[:,1]
            pl.BlockSpec(memory_space=pltpu.MemorySpace.SMEM),    # b2[0]-b2[1]
        ],
        out_specs=pl.BlockSpec((1, tm_eff), lambda i: (0, i)),    # lane-dense out
        compiler_params=pltpu.CompilerParams(
            dimension_semantics=("parallel",),    # shards row loop on v7x 2xTC
            vmem_limit_bytes=40 * 1024 * 1024),
    )(feat, gdiff, w1c, b1r, w2diff, b2diff)

    return out[0, :M]


# ------------------------------------------------------------------
# JAX glue for the graph-index plumbing
# ------------------------------------------------------------------
def _symmetrize(edge_index, edge_weights):
    # to_undirected(edge_index, edge_attr, reduce='mean') without duplicate
    # merging; exact when the directed input has no reciprocal pairs.
    # TODO(synk): mean-coalescing reciprocal/duplicate edges needs a
    # data-dependent-size unique(); not implemented here.
    rev = jnp.stack([edge_index[1], edge_index[0]])
    return (jnp.concatenate([edge_index, rev], axis=1),
            jnp.concatenate([edge_weights, edge_weights], axis=0))


def _sample_candidate_edges(key, num_nodes, num_samples):
    # TODO(synk): batched_negative_sampling rejects existing edges with a
    # data-dependent loop; here we sample uniform non-self-loop pairs instead.
    ks, kd, kp = jax.random.split(key, 3)
    src = jax.random.randint(ks, (num_samples,), 0, num_nodes, jnp.int32)
    off = jax.random.randint(kd, (num_samples,), 1, num_nodes, jnp.int32)
    dst = (src + off) % num_nodes                       # never a self-loop
    perm = jax.random.permutation(kp, num_samples)      # torch.randperm
    return jnp.stack([src, dst])[:, perm]


# ------------------------------------------------------------------
# Full LearnableEdgePerturbation forward (Pallas hot path + JAX glue)
# ------------------------------------------------------------------
def learnable_edge_perturbation_forward(
        x, edge_index, edge_weights, edge_attr, eigen_vectors,
        drop_params, add_params, rng_key, *,
        temp=1.0, num_of_edge_insert=50, ratio_of_edge_insert=0,
        num_candidate_edges=None, tm=512):
    k_drop, k_add, k_sample = jax.random.split(rng_key, 3)

    # ---------------- LearnableEdgeDropping (control_by_ratio=False) -------
    w1, b1, w2, b2 = drop_params
    p_keep = _keep_probabilities(edge_attr, k_drop, w1, b1, w2, b2,
                                 temp=temp, one_minus=True, tm=tm)
    edge_weights_ed = edge_weights * p_keep[:, None].astype(edge_weights.dtype)
    edge_index_ed, edge_weights_ed = _symmetrize(edge_index, edge_weights_ed)

    # ---------------- LearnableEdgeAdding ----------------------------------
    num_nodes = x.shape[0]
    num_edges = edge_index_ed.shape[1]
    if ratio_of_edge_insert == 0:
        k_insert = num_of_edge_insert
    else:
        k_insert = int(ratio_of_edge_insert * num_edges)
    n_cand = num_candidate_edges if num_candidate_edges is not None else num_edges
    k_insert = min(k_insert, n_cand)

    sampled_edges = _sample_candidate_edges(k_sample, num_nodes, n_cand)
    src, dst = sampled_edges[0], sampled_edges[1]
    cand_attr = jnp.concatenate(
        [(eigen_vectors[src] - eigen_vectors[dst]) ** 2, x[src], x[dst]], axis=1)

    w1a, b1a, w2a, b2a = add_params
    p_add = _keep_probabilities(cand_attr, k_add, w1a, b1a, w2a, b2a,
                                temp=temp, one_minus=False, tm=tm)

    # argsort descending + mask  ==  top-k most probable candidate edges
    top_vals, top_idx = jax.lax.top_k(p_add, k_insert)
    added_edges = sampled_edges[:, top_idx]
    added_weights = top_vals[:, None].astype(edge_weights.dtype)  # ones * p
    added_edge_index, added_edge_weights = _symmetrize(added_edges, added_weights)

    edge_index_out = jnp.concatenate([edge_index_ed, added_edge_index], axis=1)
    edge_weights_out = jnp.concatenate([edge_weights_ed, added_edge_weights], axis=0)
    # TODO(synk): coalesce(edge_index, edge_weights, reduce='sum') duplicate merge
    # has a data-dependent output size; returned un-coalesced.

    return (x, edge_index_out, edge_weights_out,
            edge_index_ed, edge_weights_ed,
            added_edge_index, added_edge_weights)


# ------------------------------------------------------------------
# Demo
# ------------------------------------------------------------------
if __name__ == "__main__":
    key = jax.random.PRNGKey(0)
    (k_x, k_eig, k_attr,
     k_w1d, k_b1d, k_w2d, k_b2d,
     k_w1a, k_b1a, k_w2a, k_b2a, k_fwd) = jax.random.split(key, 12)

    N_NODES, F_DIM, EIG_DIM, HID = 8, 16, 16, 32
    TEMP = 1.0
    NUM_EDGE_INSERT = 10

    x = jax.random.normal(k_x, (N_NODES, F_DIM), jnp.float32)
    eigen_vectors = jax.random.normal(k_eig, (N_NODES, EIG_DIM), jnp.float32)

    # 16 directed edges: two rings (step 1 and step 2) -> no reciprocal pairs,
    # so the static-shape symmetrization matches to_undirected exactly here.
    base = jnp.arange(8, dtype=jnp.int32)
    src = jnp.concatenate([base, base])
    dst = jnp.concatenate([(base + 1) % 8, (base + 2) % 8])
    edge_index = jnp.stack([src, dst])                       # (2, 16)
    edge_weights = jnp.ones((edge_index.shape[1], 1), jnp.float32)

    D_DROP = 16                          # input_dim_drop (edge_attr width)
    D_ADD = EIG_DIM + 2 * F_DIM          # input_dim_add = eig + [x_src, x_dst]
    edge_attr = jax.random.normal(k_attr, (edge_index.shape[1], D_DROP), jnp.float32)

    def linear_init(kw, kb, din, dout):
        w = jax.random.normal(kw, (din, dout), jnp.float32) / jnp.sqrt(din)
        b = 0.01 * jax.random.normal(kb, (dout,), jnp.float32)
        return w, b

    w1d, b1d = linear_init(k_w1d, k_b1d, D_DROP, HID)
    w2d_, b2d_ = linear_init(k_w2d, k_b2d, HID, 2)
    w1a, b1a = linear_init(k_w1a, k_b1a, D_ADD, HID)
    w2a_, b2a_ = linear_init(k_w2a, k_b2a, HID, 2)

    drop_params = (w1d, b1d, w2d_, b2d_)
    add_params = (w1a, b1a, w2a_, b2a_)

    outs = learnable_edge_perturbation_forward(
        x, edge_index, edge_weights, edge_attr, eigen_vectors,
        drop_params, add_params, k_fwd,
        temp=TEMP, num_of_edge_insert=NUM_EDGE_INSERT)

    (x_out, ei_out, ew_out, ei_ed, ew_ed, added_ei, added_ew) = outs
    jax.block_until_ready(outs)

    assert x_out.shape == x.shape
    assert ei_ed.shape == (2, 2 * edge_index.shape[1])
    assert ew_ed.shape == (2 * edge_index.shape[1], 1)
    assert added_ei.shape == (2, 2 * NUM_EDGE_INSERT)
    assert added_ew.shape == (2 * NUM_EDGE_INSERT, 1)
    assert ei_out.shape[1] == ei_ed.shape[1] + added_ei.shape[1]
    assert ew_out.shape[0] == ei_out.shape[1]
    assert bool(jnp.all(jnp.isfinite(ew_out)))
    assert bool(jnp.all(ew_out > 0.0)) and bool(jnp.all(ew_out <= 1.0 + 1e-5))
    print("KERNEL_OK")
</pallas_src>

<mosaic_0001>
module attributes {stable_mosaic.version = 11 : i64} {
  func.func @_keep_prob_kernel(%arg0: i32, %arg1: memref<128x16xbf16, #tpu.memory_space<vmem>>, %arg2: memref<1x128xf32, #tpu.memory_space<vmem>>, %arg3: memref<16x32xbf16, #tpu.memory_space<vmem>>, %arg4: memref<1x32xf32, #tpu.memory_space<vmem>>, %arg5: memref<1x32xf32, #tpu.memory_space<vmem>>, %arg6: memref<1xf32, #tpu.memory_space<smem>>, %arg7: memref<1x128xf32, #tpu.memory_space<vmem>>) attributes {dimension_semantics = [#tpu.dimension_semantics<parallel>], iteration_bounds = array<i64: 1>, scalar_prefetch = 0 : i64, scratch_operands = 0 : i64, tpu.core_type = #tpu.core_type<tc>, window_params = [{transform_indices = @transform_0, window_bounds = array<i64: 128, 16>}, {transform_indices = @transform_1, window_bounds = array<i64: 1, 128>}, {pipeline_mode = #tpu.pipeline_mode<synchronous>, transform_indices = @transform_2, window_bounds = array<i64: 16, 32>}, {pipeline_mode = #tpu.pipeline_mode<synchronous>, transform_indices = @transform_3, window_bounds = array<i64: 1, 32>}, {pipeline_mode = #tpu.pipeline_mode<synchronous>, transform_indices = @transform_4, window_bounds = array<i64: 1, 32>}, {transform_indices = @transform_5, window_bounds = array<i64: 1>}, {transform_indices = @transform_6, window_bounds = array<i64: 1, 128>}]} {
    %c0 = arith.constant 0 : index
    %c0_0 = arith.constant 0 : index
    %0 = vector.load %arg1[%c0, %c0_0] : memref<128x16xbf16, #tpu.memory_space<vmem>>, vector<128x16xbf16>
    %c0_1 = arith.constant 0 : index
    %c0_2 = arith.constant 0 : index
    %1 = vector.load %arg3[%c0_1, %c0_2] : memref<16x32xbf16, #tpu.memory_space<vmem>>, vector<16x32xbf16>
    %cst = arith.constant dense<0.000000e+00> : vector<128x32xf32>
    %2 = tpu.matmul %0, %1, %cst {dimension_numbers = #tpu.dot_dimension_numbers<[1], [0], [0], [1], [0, 0, 1, 1], [], []>} : vector<128x16xbf16>, vector<16x32xbf16>, vector<128x32xf32> -> vector<128x32xf32>
    %c0_3 = arith.constant 0 : index
    %c0_4 = arith.constant 0 : index
    %3 = vector.load %arg4[%c0_3, %c0_4] : memref<1x32xf32, #tpu.memory_space<vmem>>, vector<1x32xf32>
    %4 = vector.broadcast %3 : vector<1x32xf32> to vector<128x32xf32>
    %5 = arith.addf %2, %4 : vector<128x32xf32>
    %cst_5 = arith.constant 0.000000e+00 : f32
    %6 = vector.broadcast %cst_5 : f32 to vector<128x32xf32>
    %7 = arith.maximumf %5, %6 : vector<128x32xf32>
    %c0_6 = arith.constant 0 : index
    %c0_7 = arith.constant 0 : index
    %8 = vector.load %arg5[%c0_6, %c0_7] : memref<1x32xf32, #tpu.memory_space<vmem>>, vector<1x32xf32>
    %cst_8 = arith.constant dense<0.000000e+00> : vector<1x128xf32>
    %9 = tpu.matmul %8, %7, %cst_8 {dimension_numbers = #tpu.dot_dimension_numbers<[1], [1], [0], [0], [0, 0, 1, 0], [], []>} : vector<1x32xf32>, vector<128x32xf32>, vector<1x128xf32> -> vector<1x128xf32>
    %c0_9 = arith.constant 0 : index
    %10 = memref.load %arg6[%c0_9] : memref<1xf32, #tpu.memory_space<smem>>
    %11 = vector.broadcast %10 : f32 to vector<1x128xf32>
    %12 = arith.addf %9, %11 : vector<1x128xf32>
    %cst_10 = arith.constant -6.000000e+01 : f32
    %cst_11 = arith.constant 6.000000e+01 : f32
    %13 = vector.broadcast %cst_10 : f32 to vector<1x128xf32>
    %14 = arith.maximumf %13, %12 : vector<1x128xf32>
    %15 = vector.broadcast %cst_11 : f32 to vector<1x128xf32>
    %16 = arith.minimumf %15, %14 : vector<1x128xf32>
    %cst_12 = arith.constant 0.000000e+00 : f32
    %17 = vector.broadcast %cst_12 : f32 to vector<1x128xf32>
    %18 = arith.subf %17, %16 : vector<1x128xf32>
    %19 = math.exp %18 : vector<1x128xf32>
    %cst_13 = arith.constant 1.000000e+00 : f32
    %20 = vector.broadcast %cst_13 : f32 to vector<1x128xf32>
    %21 = arith.addf %20, %19 : vector<1x128xf32>
    %22 = tpu.reciprocal %21 {approx = true} : vector<1x128xf32> -> vector<1x128xf32>
    %cst_14 = arith.constant 0.000000e+00 : f32
    %23 = vector.broadcast %cst_14 : f32 to vector<1x128xf32>
    %24 = arith.subf %23, %16 : vector<1x128xf32>
    %cst_15 = arith.constant 0.000000e+00 : f32
    %25 = vector.broadcast %cst_15 : f32 to vector<1x128xf32>
    %26 = arith.subf %25, %24 : vector<1x128xf32>
    %27 = math.exp %26 : vector<1x128xf32>
    %cst_16 = arith.constant 1.000000e+00 : f32
    %28 = vector.broadcast %cst_16 : f32 to vector<1x128xf32>
    %29 = arith.addf %28, %27 : vector<1x128xf32>
    %30 = tpu.reciprocal %29 {approx = true} : vector<1x128xf32> -> vector<1x128xf32>
    %cst_17 = arith.constant 9.99999993E-9 : f32
    %31 = vector.broadcast %cst_17 : f32 to vector<1x128xf32>
    %32 = arith.addf %22, %31 : vector<1x128xf32>
    %33 = math.log %32 : vector<1x128xf32>
    %cst_18 = arith.constant 9.99999993E-9 : f32
    %34 = vector.broadcast %cst_18 : f32 to vector<1x128xf32>
    %35 = arith.addf %30, %34 : vector<1x128xf32>
    %36 = math.log %35 : vector<1x128xf32>
    %37 = arith.subf %33, %36 : vector<1x128xf32>
    %c0_19 = arith.constant 0 : index
    %c0_20 = arith.constant 0 : index
    %38 = vector.load %arg2[%c0_19, %c0_20] : memref<1x128xf32, #tpu.memory_space<vmem>>, vector<1x128xf32>
    %39 = arith.addf %37, %38 : vector<1x128xf32>
    %cst_21 = arith.constant 1.000000e+00 : f32
    %40 = vector.broadcast %cst_21 : f32 to vector<1x128xf32>
    %41 = arith.mulf %39, %40 : vector<1x128xf32>
    %cst_22 = arith.constant 0.000000e+00 : f32
    %42 = vector.broadcast %cst_22 : f32 to vector<1x128xf32>
    %43 = arith.subf %42, %41 : vector<1x128xf32>
    %44 = math.exp %43 : vector<1x128xf32>
    %cst_23 = arith.constant 1.000000e+00 : f32
    %45 = vector.broadcast %cst_23 : f32 to vector<1x128xf32>
    %46 = arith.addf %45, %44 : vector<1x128xf32>
    %47 = tpu.reciprocal %46 {approx = true} : vector<1x128xf32> -> vector<1x128xf32>
    %cst_24 = arith.constant 1.000000e+00 : f32
    %48 = vector.broadcast %cst_24 : f32 to vector<1x128xf32>
    %49 = arith.subf %48, %47 : vector<1x128xf32>
    %cst_25 = arith.constant 9.99999997E-7 : f32
    %cst_26 = arith.constant 1.000000e+00 : f32
    %50 = vector.broadcast %cst_25 : f32 to vector<1x128xf32>
    %51 = arith.maximumf %50, %49 : vector<1x128xf32>
    %52 = vector.broadcast %cst_26 : f32 to vector<1x128xf32>
    %53 = arith.minimumf %52, %51 : vector<1x128xf32>
    %c0_27 = arith.constant 0 : index
    %c0_28 = arith.constant 0 : index
    %54 = vector.load %arg7[%c0_27, %c0_28] : memref<1x128xf32, #tpu.memory_space<vmem>>, vector<1x128xf32>
    tpu.vector_store %arg7[%c0_27, %c0_28], %53 {strides = array<i32>} : memref<1x128xf32, #tpu.memory_space<vmem>>, vector<1x128xf32>,
    return
  }
  func.func @transform_0(%arg0: i32) -> (i32, i32) {
    %c0_i32 = arith.constant 0 : i32
    %c0_i32_0 = arith.constant 0 : i32
    return %arg0, %c0_i32 : i32, i32
  }
  func.func @transform_1(%arg0: i32) -> (i32, i32) {
    %c0_i32 = arith.constant 0 : i32
    %c0_i32_0 = arith.constant 0 : i32
    return %c0_i32, %arg0 : i32, i32
  }
  func.func @transform_2(%arg0: i32) -> (i32, i32) {
    %c0_i32 = arith.constant 0 : i32
    %c0_i32_0 = arith.constant 0 : i32
    %c0_i32_1 = arith.constant 0 : i32
    return %c0_i32, %c0_i32_0 : i32, i32
  }
  func.func @transform_3(%arg0: i32) -> (i32, i32) {
    %c0_i32 = arith.constant 0 : i32
    %c0_i32_0 = arith.constant 0 : i32
    %c0_i32_1 = arith.constant 0 : i32
    return %c0_i32, %c0_i32_0 : i32, i32
  }
  func.func @transform_4(%arg0: i32) -> (i32, i32) {
    %c0_i32 = arith.constant 0 : i32
    %c0_i32_0 = arith.constant 0 : i32
    %c0_i32_1 = arith.constant 0 : i32
    return %c0_i32, %c0_i32_0 : i32, i32
  }
  func.func @transform_5(%arg0: i32) -> i32 {
    %c0_i32 = arith.constant 0 : i32
    %c0_i32_0 = arith.constant 0 : i32
    return %c0_i32 : i32
  }
  func.func @transform_6(%arg0: i32) -> (i32, i32) {
    %c0_i32 = arith.constant 0 : i32
    %c0_i32_0 = arith.constant 0 : i32
    return %c0_i32, %arg0 : i32, i32
  }
}

</mosaic_0001>

<bundles_post_ra>
// kernel: tpu_custom_call.1
= control target key start
LH: loop header
LB: loop body
LE: loop exit
PB: predicated region body
PF: predicated region fallthrough
CT: control target
= control target key end

     0   :  { %s525_s0 = inlined_call_operand.vmem [shape: bf16[128,16], index: 0, kind: input, shape index: {}]   ;;  %s526_s1 = inlined_call_operand.vmem [shape: f32[1,128], index: 1, kind: input, shape index: {}]   ;;  %s527_s2 = inlined_call_operand.vmem [shape: bf16[16,32], index: 2, kind: input, shape index: {}]   ;;  %s528_s3 = inlined_call_operand.vmem [shape: f32[1,32], index: 3, kind: input, shape index: {}]   ;;  %s529_s4 = inlined_call_operand.vmem [shape: f32[1,32], index: 4, kind: input, shape index: {}]   ;;  %s530_s5 = inlined_call_operand.<no memory space> [shape: f32[1], index: 5, kind: input, shape index: {}]   ;;  %s531_s6 = inlined_call_operand.hbm [shape: f32[1,128], index: 6, kind: output, shape index: {}]  }
   0x1   :  { %v375_v0 = vld [vmem:[%s527_s2] sm:$0xff] }
   0x2   :  { %v371_v1 = vld [vmem:[%s525_s0 + $0x20] sm:$0xff] }
   0x3   :  { %12 = vsyncpa [#allocation4], 0  ;;  %377 = vmatpush.bf16.msra.mxu3 %v375_v0  ;;  %vm94_vm0 = vcmask 130048   ;;  %126 = vmatpush.bf16.msra.mxu0 %v375_v0  ;;  %v372_v2 = vld [vmem:[%s525_s0 + $0x28] sm:$0xff]  ;;  %v367_v3 = vld [vmem:[%s525_s0] sm:$0xff]  ;;  %vm187_vm1 = vcmask 261120   ;;  %v186_v59 = vstv %s530_s5 }
   0x4   :  { %376 = vmatpush.bf16.msra.mxu2 %v375_v0  ;;  %v370_v4 = vld [vmem:[%s525_s0 + $0x18] sm:$0xff]  ;;  %v373_v5 = vld [vmem:[%s525_s0 + $0x30] sm:$0xff]  ;;  %v368_v6 = vld [vmem:[%s525_s0 + $0x8] sm:$0xff]  ;;  %s422_s18 = smov [#allocation3]   ;;  %s296_s22 = sshll.u32 %s531_s6, 4  ;;  %s297_s22 = int_to_ptr.hbm [resolvable:$true] %s296_s22 }
   0x5   :  { %v374_v7 = vld [vmem:[%s525_s0 + $0x38] sm:$0xff]  ;;  %v369_v8 = vld [vmem:[%s525_s0 + $0x10] sm:$0xff]  ;;  %v379_v18 = vld [vmem:[%s528_s3] ss:$0 sm:$0xff]  ;;  %s294_s19 = sshll.u32 %s422_s18, 4  ;;  %s295_s19 = int_to_ptr.vmem [resolvable:$true] %s294_s19 }
   0x6   :  { %345 = vmatmul.msk.bf16.vlgmr.msra.gmra.mxu3 %vm94_vm0, %v371_v1  ;;  %341 = vmatmul.msk.bf16.vlgmr.msra.gmra.mxu0 %vm94_vm0, %v367_v3  ;;  %v184_v58 = vld [vmem:[%s529_s4] sm:$0x1] }
   0x7   :  { %344 = vmatmul.msk.bf16.vlgmr.msra.gmra.mxu2 %vm94_vm0, %v370_v4 }
  0x16   :  { %346 = vmatmul.msk.bf16.gmra.mxu3 %vm94_vm0, %v372_v2  ;;  %342 = vmatmul.msk.bf16.gmra.mxu0 %vm94_vm0, %v368_v6 }
  0x26   :  { %347 = vmatmul.msk.bf16.gmra.mxu3 %vm94_vm0, %v373_v5  ;;  %343 = vmatmul.msk.bf16.gmra.mxu0 %vm94_vm0, %v369_v8 }
  0x36   :  { %348 = vmatmul.msk.bf16.gmra.mxu3 %vm94_vm0, %v374_v7 }
  0x83   :  { %v128_v15 = vpop.f32.mrf.mxu0 }
  0x84   :  { %v129_v55 = vadd.f32 %v379_v18, %v128_v15  ;;  %v278_v15 = vld [vmem:[%s526_s1] sm:$0x1] }
  0x86   :  { %v168_v57 = vmax.f32 %v129_v55, 0.0 }
  0x89   :  { %v148_v9 = vpop.f32.mrf.mxu3 }
  0x8a   :  { %v143_v31 = vpop.f32.mrf.mxu2  ;;  %v149_v37 = vadd.f32 %v379_v18, %v148_v9 }
  0x8b   :  { %v130_v17 = vpop.f32.mrf.mxu0  ;;  %v144_v42 = vadd.f32 %v379_v18, %v143_v31 }
  0x8c   :  { %v176_v40 = vmax.f32 %v149_v37, 0.0  ;;  %v131_v53 = vadd.f32 %v379_v18, %v130_v17 }
  0x8d   :  { %v174_v45 = vmax.f32 %v144_v42, 0.0 }
  0x8e   :  { %v169_v56 = vmax.f32 %v131_v53, 0.0 }
  0x91   :  { %v150_v10 = vpop.f32.mrf.mxu3 }
  0x92   :  { %v151_v34 = vadd.f32 %v379_v18, %v150_v10  ;;  %v145_v39 = vpop.f32.mrf.mxu2 }
  0x93   :  { %v133_v23 = vpop.f32.mrf.mxu0  ;;  %v146_v41 = vadd.f32 %v379_v18, %v145_v39 }
  0x94   :  { %v177_v38 = vmax.f32 %v151_v34, 0.0  ;;  %v134_v51 = vadd.f32 %v379_v18, %v133_v23 }
  0x95   :  { %v175_v43 = vmax.f32 %v146_v41, 0.0 }
  0x96   :  { %v170_v54 = vmax.f32 %v134_v51, 0.0 }
  0x99   :  { %v153_v11 = vpop.f32.mrf.mxu3 }
  0x9a   :  { %v154_v32 = vadd.f32 %v379_v18, %v153_v11 }
  0x9b   :  { %v135_v30 = vpop.f32.mrf.mxu0 }
  0x9c   :  { %v178_v35 = vmax.f32 %v154_v32, 0.0  ;;  %v136_v49 = vadd.f32 %v379_v18, %v135_v30 }
  0x9e   :  { %v171_v52 = vmax.f32 %v136_v49, 0.0 }
  0xa1   :  { %v155_v12 = vpop.f32.mrf.mxu3 }
  0xa2   :  { %v156_v28 = vadd.f32 %v379_v18, %v155_v12 }
  0xa3   :  { %v138_v36 = vpop.f32.mrf.mxu0 }
  0xa4   :  { %v179_v33 = vmax.f32 %v156_v28, 0.0  ;;  %v139_v47 = vadd.f32 %v379_v18, %v138_v36 }
  0xa6   :  { %v172_v50 = vmax.f32 %v139_v47, 0.0 }
  0xa9   :  { %v158_v13 = vpop.f32.mrf.mxu3 }
  0xaa   :  { %v159_v26 = vadd.f32 %v379_v18, %v158_v13 }
  0xab   :  { %v140_v44 = vpop.f32.mrf.mxu0 }
  0xac   :  { %v180_v29 = vmax.f32 %v159_v26, 0.0  ;;  %v141_v46 = vadd.f32 %v379_v18, %v140_v44 }
  0xae   :  { %v173_v48 = vmax.f32 %v141_v46, 0.0 }
  0xb1   :  { %v160_v14 = vpop.f32.mrf.mxu3 }
  0xb2   :  { %v161_v24 = vadd.f32 %v379_v18, %v160_v14 }
  0xb4   :  { %v181_v27 = vmax.f32 %v161_v24, 0.0 }
  0xb9   :  { %v163_v16 = vpop.f32.mrf.mxu3 }
  0xba   :  { %v164_v21 = vadd.f32 %v379_v18, %v163_v16 }
  0xbc   :  { %v182_v25 = vmax.f32 %v164_v21, 0.0 }
  0xc1   :  { %v165_v19 = vpop.f32.mrf.mxu3 }
  0xc2   :  { %v166_v20 = vadd.f32 %v379_v18, %v165_v19 }
  0xc4   :  { %v183_v22 = vmax.f32 %v166_v20, 0.0 }
  0xc6   :  { %349 = vmatpush.xpose.msk.msra.mxu1 %vm187_vm1, %v183_v22 }
  0xca   :  { %350 = vmatpush.xpose.msk.msra.mxu1 %vm187_vm1, %v182_v25 }
  0xce   :  { %351 = vmatpush.xpose.msk.msra.mxu1 %vm187_vm1, %v181_v27 }
  0xd2   :  { %352 = vmatpush.xpose.msk.msra.mxu1 %vm187_vm1, %v180_v29 }
  0xd6   :  { %353 = vmatpush.xpose.msk.msra.mxu1 %vm187_vm1, %v179_v33 }
  0xda   :  { %354 = vmatpush.xpose.msk.msra.mxu1 %vm187_vm1, %v178_v35 }
  0xde   :  { %355 = vmatpush.xpose.msk.msra.mxu1 %vm187_vm1, %v177_v38 }
  0xe2   :  { %356 = vmatpush.xpose.msk.msra.mxu1 %vm187_vm1, %v176_v40 }
  0xe6   :  { %357 = vmatpush.xpose.msk.msra.mxu1 %vm187_vm1, %v175_v43 }
  0xea   :  { %358 = vmatpush.xpose.msk.msra.mxu1 %vm187_vm1, %v174_v45 }
  0xee   :  { %359 = vmatpush.xpose.msk.msra.mxu1 %vm187_vm1, %v173_v48 }
  0xf2   :  { %360 = vmatpush.xpose.msk.msra.mxu1 %vm187_vm1, %v172_v50 }
  0xf6   :  { %361 = vmatpush.xpose.msk.msra.mxu1 %vm187_vm1, %v171_v52 }
  0xfa   :  { %362 = vmatpush.xpose.msk.msra.mxu1 %vm187_vm1, %v170_v54 }
  0xfe   :  { %363 = vmatpush.xpose.msk.msra.mxu1 %vm187_vm1, %v169_v56 }
 0x102   :  { %364 = vmatpush.xpose.msk.msra.mxu1 %vm187_vm1, %v168_v57 }
 0x105   :  { %365 = vmatmul.msk.f32.vlgmr.msra.gmra.mxu1 %vm187_vm1, %v184_v58 }
 0x182   :  { %v256_v60 = vpop.f32.mrf.mxu1 }
 0x183   :  { %v257_v61 = vadd.f32 %v256_v60, %v186_v59 }
 0x185   :  { %v366_v62 = vclamps-f32 %v257_v61, 60.0 }
 0x187   :  { %v261_v63 = vsub.f32 0.0, %v366_v62 }
 0x189   :  { %v262_v0 = vmul.f32 1.442695, %v261_v63  ;;  %v266_v1 = vsub.f32 0.0, %v261_v63 }
 0x18b   :  { %380 = vpow2.f32 %v262_v0  ;;  %v267_v2 = vmul.f32 1.442695, %v266_v1 }
 0x18d   :  { %382 = vpow2.f32 %v267_v2 }
 0x191   :  { %v381_v3 = vpop.eup %380 }
 0x192   :  { %v264_v4 = vadd.f32 1.0, %v381_v3 }
 0x193   :  { %v383_v5 = vpop.eup %382 }
 0x194   :  { %384 = vrcp.f32 %v264_v4  ;;  %v269_v6 = vadd.f32 1.0, %v383_v5 }
 0x196   :  { %386 = vrcp.f32 %v269_v6 }
 0x19a   :  { %v385_v7 = vpop.eup %384 }
 0x19b   :  { %v271_v8 = vadd.f32 1e-08, %v385_v7 }
 0x19c   :  { %v387_v9 = vpop.eup %386 }
 0x19d   :  { %388 = vlog2.f32 %v271_v8  ;;  %v274_v10 = vadd.f32 1e-08, %v387_v9 }
 0x19f   :  { %390 = vlog2.f32 %v274_v10 }
 0x1a3   :  { %v389_v11 = vpop.eup %388 }
 0x1a4   :  { %v273_v13 = vmul.f32 0.6931472, %v389_v11 }
 0x1a5   :  { %v391_v12 = vpop.eup %390 }
 0x1a6   :  { %v276_v14 = vmul.f32 0.6931472, %v391_v12 }
 0x1a8   :  { %v277_v16 = vsub.f32 %v273_v13, %v276_v14 }
 0x1aa   :  { %v279_v17 = vadd.f32 %v278_v15, %v277_v16 }
 0x1ac   :  { %v280_v18 = vsub.f32 0.0, %v279_v17 }
 0x1ae   :  { %v281_v19 = vmul.f32 1.442695, %v280_v18 }
 0x1b0   :  { %392 = vpow2.f32 %v281_v19 }
 0x1b6   :  { %v393_v20 = vpop.eup %392 }
 0x1b7   :  { %v283_v21 = vadd.f32 1.0, %v393_v20 }
 0x1b9   :  { %394 = vrcp.f32 %v283_v21 }
 0x1bf   :  { %v395_v22 = vpop.eup %394 }
 0x1c0   :  { %v285_v23 = vsub.f32 1.0, %v395_v22 }
 0x1c2   :  { %v286_v24 = vmax.f32 %v285_v23, 1e-06 }
 0x1c4   :  { %v287_v25 = vmin.f32 %v286_v24, 1.0 }
 0x1c6   :  { %288 = vst [vmem:[#allocation3] sm:$0x1] %v287_v25 }
 0x1c7   :  { %299 = dma.vmem_to_hbm [thread:$0]  %s295_s19, 16, %s297_s22, [#allocation4]  }
 0x1c8   :  { %420 = dma.done.wait [#allocation4], 16  }
 0x1c9   :  { %421 = vsyncadd [#allocation4], 4294967280 }
 0x1ca   :  { %304 = vsyncpa [#allocation4], 1 }

</bundles_post_ra>
